<compile_context>
chip_gen: v5e
topology: v5e:2x2
jax: 0.10.0
libtpu: 0.0.40
codegen_flags: <defaults>
</compile_context>

<pallas_src>
import functools

import jax
import jax.numpy as jnp
from jax import lax
from jax.experimental import pallas as pl
from jax.experimental.pallas import tpu as pltpu

LN_EPS = 1e-5  # torch.nn.LayerNorm default


def _round_up(n, m):
    return ((n + m - 1) // m) * m


def _pad2(m, rows, cols):
    return jnp.pad(m, ((0, rows - m.shape[0]), (0, cols - m.shape[1])))


def _critic_kernel(xa_ref, w1_ref, w2h_ref, w2a_ref, vec_ref, out_ref,
                   *, hidden, in_p):
    """One batch tile of the fused Critic forward.

    Every padded feature lane of every intermediate is exactly zero because
    the wrapper zero-pads inputs, weights, biases, gamma and beta, so the
    LayerNorm statistics only need dividing by the true hidden width
    (no lane masking required).
    """
    inv_n = 1.0 / float(hidden)

    xa = xa_ref[...]                 # (tile_b, in_p + a_p), compute_dtype
    x = xa[:, :in_p]                 # 128-aligned static split: free view
    a = xa[:, in_p:]

    b1 = vec_ref[0:1, :]
    g1 = vec_ref[1:2, :]
    be1 = vec_ref[2:3, :]
    b2 = vec_ref[3:4, :]
    g2 = vec_ref[4:5, :]
    be2 = vec_ref[5:6, :]
    wv = vec_ref[6:7, :]             # value-head weight row, f32
    bv = vec_ref[7:8, 0:1]           # value-head bias, (1, 1)

    def layernorm(h, gamma, beta):
        # One-pass stats over the true hidden width (padded lanes are zero).
        mu = jnp.sum(h, axis=-1, keepdims=True) * inv_n
        ex2 = jnp.sum(h * h, axis=-1, keepdims=True) * inv_n
        var = jnp.maximum(ex2 - mu * mu, 0.0)
        # rsqrt stays on the EUP; gamma/beta are zero on padded lanes so the
        # padded output lanes stay exactly zero for the next matmul.
        return (h - mu) * lax.rsqrt(var + LN_EPS) * gamma + beta

    # ---- linear1 + ln1 + relu --------------------------------------------
    h = jnp.dot(x, w1_ref[...], preferred_element_type=jnp.float32) + b1
    h = jnp.maximum(layernorm(h, g1, be1), 0.0)

    # ---- cat(h, actions) -> linear2 + ln2 + relu ----------------------------
    # cat(h, a) @ W2 == h @ W2_h + a @ W2_a  (no concat needed in-kernel).
    h2 = (jnp.dot(h.astype(w2h_ref.dtype), w2h_ref[...],
                  preferred_element_type=jnp.float32)
          + jnp.dot(a, w2a_ref[...], preferred_element_type=jnp.float32)
          + b2)
    h2 = jnp.maximum(layernorm(h2, g2, be2), 0.0)

    # ---- value head, lane-dense result --------------------------------------
    # (1, H) x (T, H) contracted over H -> (1, T): batch lands on the lanes.
    v = lax.dot_general(wv, h2, (((1,), (1,)), ((), ())),
                        preferred_element_type=jnp.float32)
    out_ref[...] = (v + bv).astype(out_ref.dtype)


def critic_forward(inputs, actions, params, *, tile_b=512,
                   compute_dtype=jnp.float32):
    """inputs: [B, num_inputs], actions: [B, num_actions] -> V: [B, 1].

    compute_dtype=jnp.bfloat16 streams activations + weights in bf16 with f32
    accumulation — recommended on v5e, v6e and v7x (LN / ReLU stay f32).
    """
    (w1, b1, g1, be1, w2h, w2a, b2, g2, be2, wv, bv) = params

    B, num_inputs = inputs.shape
    _, num_actions = actions.shape
    hidden = w1.shape[1]

    # Lane-aligned (multiple-of-128) feature dims.
    in_p = _round_up(num_inputs, 128)
    a_p = _round_up(num_actions, 128)
    h_p = _round_up(hidden, 128)

    # Batch tile: multiple of 8 sublanes; guarantee >= 2 grid tiles whenever
    # the padded batch allows it so v7x's two TensorCores both get work.
    tile_b = _round_up(max(8, min(int(tile_b), 1024)), 8)
    b8 = _round_up(B, 8)
    if b8 >= 16:
        tile_b = min(tile_b, _round_up(b8 // 2, 8))
    else:
        tile_b = b8
    b_p = _round_up(B, tile_b)
    num_tiles = b_p // tile_b

    # ---- pad / pack operands in the wrapper (zero padding) ------------------
    # One streamed activation array [x | actions]; kernel splits it at in_p.
    xa = jnp.concatenate(
        [_pad2(inputs.astype(compute_dtype), b_p, in_p),
         _pad2(actions.astype(compute_dtype), b_p, a_p)], axis=1)

    w1_p = _pad2(w1, in_p, h_p).astype(compute_dtype)
    w2h_p = _pad2(w2h, h_p, h_p).astype(compute_dtype)
    w2a_p = _pad2(w2a, a_p, h_p).astype(compute_dtype)

    # Pack the per-feature vectors into one (8, h_p) f32 block.
    # Rows: b1, g1, be1, b2, g2, be2, wv_row, bv.
    row = lambda v: _pad2(v.reshape(1, -1).astype(jnp.float32), 1, h_p)
    vec = jnp.concatenate(
        [row(b1), row(g1), row(be1), row(b2), row(g2), row(be2),
         row(wv.reshape(1, -1)), row(bv)], axis=0)

    kernel = functools.partial(_critic_kernel, hidden=hidden, in_p=in_p)

    # Constant blocks: single-buffered (they never change across the grid).
    resident = functools.partial(pl.BlockSpec, pipeline_mode=pl.Buffered(1))
    in_specs = [
        pl.BlockSpec((tile_b, in_p + a_p), lambda i: (i, 0)),  # streamed [x|a]
        resident((in_p, h_p), lambda i: (0, 0)),               # w1
        resident((h_p, h_p), lambda i: (0, 0)),                # w2h
        resident((a_p, h_p), lambda i: (0, 0)),                # w2a
        resident((8, h_p), lambda i: (0, 0)),                  # packed vectors
    ]
    out_spec = pl.BlockSpec((1, tile_b), lambda i: (0, i))     # lane-dense row

    # ---- VMEM budget -> explicit vmem_limit_bytes ---------------------------
    cbytes = jnp.dtype(compute_dtype).itemsize
    act_vmem = 2 * tile_b * (in_p + a_p) * cbytes              # 2-buffered xa
    out_vmem = 2 * 8 * tile_b * 4                              # output (padded)
    wgt_vmem = (in_p + h_p + a_p) * h_p * cbytes + 8 * h_p * 4 # Buffered(1)
    tmp_vmem = 4 * tile_b * h_p * 4                            # h / h2 temps
    need = act_vmem + out_vmem + wgt_vmem + tmp_vmem
    try:
        vmem_cap = int(pltpu.get_tpu_info().vmem_capacity_bytes)
    except Exception:
        vmem_cap = 64 << 20                                    # v7x physical
    vmem_limit = int(min(max(2 * need, 32 << 20), int(0.9 * vmem_cap)))
    # TODO(synk): for very large hidden (w2h >= ~half of physical VMEM) add a
    # K-tiled ("arbitrary") grid axis over h_p with an f32 VMEM accumulator
    # instead of keeping w2h fully resident (needed on v7x's 64 MiB VMEM).
    # TODO(synk): optional fp8 weights (f32 accumulation) on v7x would halve
    # resident VMEM again and ~2x MXU throughput for the h_p x h_p matmul.

    flops = 2 * b_p * (in_p * h_p + h_p * h_p + a_p * h_p + h_p)
    bytes_accessed = (b_p * (in_p + a_p) * cbytes
                      + (in_p + h_p + a_p) * h_p * cbytes + 8 * h_p * 4
                      + 4 * b_p)
    cost = pl.CostEstimate(flops=int(flops), transcendentals=int(2 * b_p),
                           bytes_accessed=int(bytes_accessed))

    out = pl.pallas_call(
        kernel,
        out_shape=jax.ShapeDtypeStruct((1, b_p), jnp.float32),
        grid=(num_tiles,),
        in_specs=in_specs,
        out_specs=out_spec,
        compiler_params=pltpu.CompilerParams(
            dimension_semantics=("parallel",),
            vmem_limit_bytes=vmem_limit),
        cost_estimate=cost,
    )(xa, w1_p, w2h_p, w2a_p, vec)

    return out[0, :B].reshape(B, 1)


def init_params(key, num_inputs, num_actions, hidden):
    """Deterministic synthetic init mirroring the PyTorch module's shapes."""
    ks = jax.random.split(key, 6)

    def linear(k, fan_in, fan_out):
        # torch Linear default: U(-1/sqrt(fan_in), 1/sqrt(fan_in))
        bound = 1.0 / jnp.sqrt(jnp.float32(fan_in))
        kw, kb = jax.random.split(k)
        w = jax.random.uniform(kw, (fan_in, fan_out), jnp.float32, -bound, bound)
        b = jax.random.uniform(kb, (1, fan_out), jnp.float32, -bound, bound)
        return w, b

    w1, b1 = linear(ks[0], num_inputs, hidden)
    g1 = jnp.ones((1, hidden), jnp.float32)
    be1 = jnp.zeros((1, hidden), jnp.float32)

    w2, b2 = linear(ks[1], hidden + num_actions, hidden)
    w2h, w2a = w2[:hidden, :], w2[hidden:, :]
    g2 = jnp.ones((1, hidden), jnp.float32)
    be2 = jnp.zeros((1, hidden), jnp.float32)

    wv, bv = linear(ks[2], hidden, 1)
    wv = wv * 0.1   # self.V.weight.data.mul_(0.1)
    bv = bv * 0.1   # self.V.bias.data.mul_(0.1)

    return (w1, b1, g1, be1, w2h, w2a, b2, g2, be2, wv, bv)


def critic_reference(inputs, actions, params):
    (w1, b1, g1, be1, w2h, w2a, b2, g2, be2, wv, bv) = params

    def ln(h, gamma, beta):
        mu = jnp.mean(h, axis=-1, keepdims=True)
        var = jnp.mean((h - mu) * (h - mu), axis=-1, keepdims=True)
        return (h - mu) * lax.rsqrt(var + LN_EPS) * gamma + beta

    h = inputs @ w1 + b1
    h = jnp.maximum(ln(h, g1, be1), 0.0)
    h2 = h @ w2h + actions @ w2a + b2
    h2 = jnp.maximum(ln(h2, g2, be2), 0.0)
    return h2 @ wv + bv


if __name__ == "__main__":
    B, NUM_INPUTS, NUM_ACTIONS, HIDDEN = 8, 32, 8, 32

    key = jax.random.PRNGKey(0)
    k_in, k_act, k_par = jax.random.split(key, 3)
    inputs = jax.random.normal(k_in, (B, NUM_INPUTS), jnp.float32)
    actions = jax.random.normal(k_act, (B, NUM_ACTIONS), jnp.float32)
    params = init_params(k_par, NUM_INPUTS, NUM_ACTIONS, HIDDEN)

    # f32 verification run.  For speed on real workloads use
    # compute_dtype=jnp.bfloat16 (loosen the tolerance to ~2e-2 in that case).
    v = critic_forward(inputs, actions, params, compute_dtype=jnp.float32)
    jax.block_until_ready(v)

    v_ref = critic_reference(inputs, actions, params)
    assert v.shape == (B, 1)
    assert jnp.allclose(v, v_ref, atol=1e-4, rtol=1e-4), (
        float(jnp.max(jnp.abs(v - v_ref))))

    print("KERNEL_OK")
</pallas_src>

<mosaic_0001>
module attributes {stable_mosaic.version = 11 : i64} {
  func.func @_critic_kernel(%arg0: i32, %arg1: memref<8x256xf32, #tpu.memory_space<vmem>>, %arg2: memref<128x128xf32, #tpu.memory_space<vmem>>, %arg3: memref<128x128xf32, #tpu.memory_space<vmem>>, %arg4: memref<128x128xf32, #tpu.memory_space<vmem>>, %arg5: memref<8x128xf32, #tpu.memory_space<vmem>>, %arg6: memref<1x8xf32, #tpu.memory_space<vmem>>) attributes {dimension_semantics = [#tpu.dimension_semantics<parallel>], iteration_bounds = array<i64: 1>, scalar_prefetch = 0 : i64, scratch_operands = 0 : i64, tpu.core_type = #tpu.core_type<tc>, window_params = [{transform_indices = @transform_0, window_bounds = array<i64: 8, 256>}, {pipeline_mode = #tpu.pipeline_mode<synchronous>, transform_indices = @transform_1, window_bounds = array<i64: 128, 128>}, {pipeline_mode = #tpu.pipeline_mode<synchronous>, transform_indices = @transform_2, window_bounds = array<i64: 128, 128>}, {pipeline_mode = #tpu.pipeline_mode<synchronous>, transform_indices = @transform_3, window_bounds = array<i64: 128, 128>}, {pipeline_mode = #tpu.pipeline_mode<synchronous>, transform_indices = @transform_4, window_bounds = array<i64: 8, 128>}, {transform_indices = @transform_5, window_bounds = array<i64: 1, 8>}]} {
    %c0 = arith.constant 0 : index
    %c0_0 = arith.constant 0 : index
    %0 = vector.load %arg1[%c0, %c0_0] : memref<8x256xf32, #tpu.memory_space<vmem>>, vector<8x256xf32>
    %1 = vector.extract_strided_slice %0 {offsets = [0, 0], sizes = [8, 128], strides = [1, 1]} : vector<8x256xf32> to vector<8x128xf32>
    %2 = vector.extract_strided_slice %0 {offsets = [0, 128], sizes = [8, 128], strides = [1, 1]} : vector<8x256xf32> to vector<8x128xf32>
    %c0_1 = arith.constant 0 : index
    %c0_2 = arith.constant 0 : index
    %3 = vector.load %arg5[%c0_1, %c0_2] : memref<8x128xf32, #tpu.memory_space<vmem>>, vector<1x128xf32>
    %c1 = arith.constant 1 : index
    %c0_3 = arith.constant 0 : index
    %4 = vector.load %arg5[%c1, %c0_3] : memref<8x128xf32, #tpu.memory_space<vmem>>, vector<1x128xf32>
    %c2 = arith.constant 2 : index
    %c0_4 = arith.constant 0 : index
    %5 = vector.load %arg5[%c2, %c0_4] : memref<8x128xf32, #tpu.memory_space<vmem>>, vector<1x128xf32>
    %c3 = arith.constant 3 : index
    %c0_5 = arith.constant 0 : index
    %6 = vector.load %arg5[%c3, %c0_5] : memref<8x128xf32, #tpu.memory_space<vmem>>, vector<1x128xf32>
    %c4 = arith.constant 4 : index
    %c0_6 = arith.constant 0 : index
    %7 = vector.load %arg5[%c4, %c0_6] : memref<8x128xf32, #tpu.memory_space<vmem>>, vector<1x128xf32>
    %c5 = arith.constant 5 : index
    %c0_7 = arith.constant 0 : index
    %8 = vector.load %arg5[%c5, %c0_7] : memref<8x128xf32, #tpu.memory_space<vmem>>, vector<1x128xf32>
    %c6 = arith.constant 6 : index
    %c0_8 = arith.constant 0 : index
    %9 = vector.load %arg5[%c6, %c0_8] : memref<8x128xf32, #tpu.memory_space<vmem>>, vector<1x128xf32>
    %c7 = arith.constant 7 : index
    %c0_9 = arith.constant 0 : index
    %10 = vector.load %arg5[%c7, %c0_9] : memref<8x128xf32, #tpu.memory_space<vmem>>, vector<1x1xf32>
    %c0_10 = arith.constant 0 : index
    %c0_11 = arith.constant 0 : index
    %11 = vector.load %arg2[%c0_10, %c0_11] : memref<128x128xf32, #tpu.memory_space<vmem>>, vector<128x128xf32>
    %cst = arith.constant dense<0.000000e+00> : vector<8x128xf32>
    %12 = tpu.matmul %1, %11, %cst {dimension_numbers = #tpu.dot_dimension_numbers<[1], [0], [0], [1], [0, 0, 1, 1], [], []>} : vector<8x128xf32>, vector<128x128xf32>, vector<8x128xf32> -> vector<8x128xf32>
    %13 = vector.broadcast %3 : vector<1x128xf32> to vector<8x128xf32>
    %14 = arith.addf %12, %13 : vector<8x128xf32>
    %cst_12 = arith.constant dense<0.000000e+00> : vector<8xf32>
    %15 = vector.multi_reduction <add>, %14, %cst_12 [1] : vector<8x128xf32> to vector<8xf32>
    %16 = vector.shape_cast %15 : vector<8xf32> to vector<8x1xf32>
    %cst_13 = arith.constant 3.125000e-02 : f32
    %17 = vector.broadcast %cst_13 : f32 to vector<8x1xf32>
    %18 = arith.mulf %16, %17 : vector<8x1xf32>
    %19 = arith.mulf %14, %14 : vector<8x128xf32>
    %cst_14 = arith.constant dense<0.000000e+00> : vector<8xf32>
    %20 = vector.multi_reduction <add>, %19, %cst_14 [1] : vector<8x128xf32> to vector<8xf32>
    %21 = vector.shape_cast %20 : vector<8xf32> to vector<8x1xf32>
    %cst_15 = arith.constant 3.125000e-02 : f32
    %22 = vector.broadcast %cst_15 : f32 to vector<8x1xf32>
    %23 = arith.mulf %21, %22 : vector<8x1xf32>
    %24 = arith.mulf %18, %18 : vector<8x1xf32>
    %25 = arith.subf %23, %24 : vector<8x1xf32>
    %cst_16 = arith.constant 0.000000e+00 : f32
    %26 = vector.broadcast %cst_16 : f32 to vector<8x1xf32>
    %27 = arith.maximumf %25, %26 : vector<8x1xf32>
    %28 = vector.broadcast %18 : vector<8x1xf32> to vector<8x128xf32>
    %29 = arith.subf %14, %28 : vector<8x128xf32>
    %cst_17 = arith.constant 9.99999974E-6 : f32
    %30 = vector.broadcast %cst_17 : f32 to vector<8x1xf32>
    %31 = arith.addf %27, %30 : vector<8x1xf32>
    %32 = math.rsqrt %31 : vector<8x1xf32>
    %33 = vector.broadcast %32 : vector<8x1xf32> to vector<8x128xf32>
    %34 = arith.mulf %29, %33 : vector<8x128xf32>
    %35 = vector.broadcast %4 : vector<1x128xf32> to vector<8x128xf32>
    %36 = arith.mulf %34, %35 : vector<8x128xf32>
    %37 = vector.broadcast %5 : vector<1x128xf32> to vector<8x128xf32>
    %38 = arith.addf %36, %37 : vector<8x128xf32>
    %cst_18 = arith.constant 0.000000e+00 : f32
    %39 = vector.broadcast %cst_18 : f32 to vector<8x128xf32>
    %40 = arith.maximumf %38, %39 : vector<8x128xf32>
    %c0_19 = arith.constant 0 : index
    %c0_20 = arith.constant 0 : index
    %41 = vector.load %arg3[%c0_19, %c0_20] : memref<128x128xf32, #tpu.memory_space<vmem>>, vector<128x128xf32>
    %cst_21 = arith.constant dense<0.000000e+00> : vector<8x128xf32>
    %42 = tpu.matmul %40, %41, %cst_21 {dimension_numbers = #tpu.dot_dimension_numbers<[1], [0], [0], [1], [0, 0, 1, 1], [], []>} : vector<8x128xf32>, vector<128x128xf32>, vector<8x128xf32> -> vector<8x128xf32>
    %c0_22 = arith.constant 0 : index
    %c0_23 = arith.constant 0 : index
    %43 = vector.load %arg4[%c0_22, %c0_23] : memref<128x128xf32, #tpu.memory_space<vmem>>, vector<128x128xf32>
    %cst_24 = arith.constant dense<0.000000e+00> : vector<8x128xf32>
    %44 = tpu.matmul %2, %43, %cst_24 {dimension_numbers = #tpu.dot_dimension_numbers<[1], [0], [0], [1], [0, 0, 1, 1], [], []>} : vector<8x128xf32>, vector<128x128xf32>, vector<8x128xf32> -> vector<8x128xf32>
    %45 = arith.addf %42, %44 : vector<8x128xf32>
    %46 = vector.broadcast %6 : vector<1x128xf32> to vector<8x128xf32>
    %47 = arith.addf %45, %46 : vector<8x128xf32>
    %cst_25 = arith.constant dense<0.000000e+00> : vector<8xf32>
    %48 = vector.multi_reduction <add>, %47, %cst_25 [1] : vector<8x128xf32> to vector<8xf32>
    %49 = vector.shape_cast %48 : vector<8xf32> to vector<8x1xf32>
    %cst_26 = arith.constant 3.125000e-02 : f32
    %50 = vector.broadcast %cst_26 : f32 to vector<8x1xf32>
    %51 = arith.mulf %49, %50 : vector<8x1xf32>
    %52 = arith.mulf %47, %47 : vector<8x128xf32>
    %cst_27 = arith.constant dense<0.000000e+00> : vector<8xf32>
    %53 = vector.multi_reduction <add>, %52, %cst_27 [1] : vector<8x128xf32> to vector<8xf32>
    %54 = vector.shape_cast %53 : vector<8xf32> to vector<8x1xf32>
    %cst_28 = arith.constant 3.125000e-02 : f32
    %55 = vector.broadcast %cst_28 : f32 to vector<8x1xf32>
    %56 = arith.mulf %54, %55 : vector<8x1xf32>
    %57 = arith.mulf %51, %51 : vector<8x1xf32>
    %58 = arith.subf %56, %57 : vector<8x1xf32>
    %cst_29 = arith.constant 0.000000e+00 : f32
    %59 = vector.broadcast %cst_29 : f32 to vector<8x1xf32>
    %60 = arith.maximumf %58, %59 : vector<8x1xf32>
    %61 = vector.broadcast %51 : vector<8x1xf32> to vector<8x128xf32>
    %62 = arith.subf %47, %61 : vector<8x128xf32>
    %cst_30 = arith.constant 9.99999974E-6 : f32
    %63 = vector.broadcast %cst_30 : f32 to vector<8x1xf32>
    %64 = arith.addf %60, %63 : vector<8x1xf32>
    %65 = math.rsqrt %64 : vector<8x1xf32>
    %66 = vector.broadcast %65 : vector<8x1xf32> to vector<8x128xf32>
    %67 = arith.mulf %62, %66 : vector<8x128xf32>
    %68 = vector.broadcast %7 : vector<1x128xf32> to vector<8x128xf32>
    %69 = arith.mulf %67, %68 : vector<8x128xf32>
    %70 = vector.broadcast %8 : vector<1x128xf32> to vector<8x128xf32>
    %71 = arith.addf %69, %70 : vector<8x128xf32>
    %cst_31 = arith.constant 0.000000e+00 : f32
    %72 = vector.broadcast %cst_31 : f32 to vector<8x128xf32>
    %73 = arith.maximumf %71, %72 : vector<8x128xf32>
    %cst_32 = arith.constant dense<0.000000e+00> : vector<1x8xf32>
    %74 = tpu.matmul %9, %73, %cst_32 {dimension_numbers = #tpu.dot_dimension_numbers<[1], [1], [0], [0], [0, 0, 1, 0], [], []>} : vector<1x128xf32>, vector<8x128xf32>, vector<1x8xf32> -> vector<1x8xf32>
    %75 = vector.broadcast %10 : vector<1x1xf32> to vector<1x8xf32>
    %76 = arith.addf %74, %75 : vector<1x8xf32>
    %c0_33 = arith.constant 0 : index
    %c0_34 = arith.constant 0 : index
    %77 = vector.load %arg6[%c0_33, %c0_34] : memref<1x8xf32, #tpu.memory_space<vmem>>, vector<1x8xf32>
    tpu.vector_store %arg6[%c0_33, %c0_34], %76 {strides = array<i32>} : memref<1x8xf32, #tpu.memory_space<vmem>>, vector<1x8xf32>,
    return
  }
  func.func @transform_0(%arg0: i32) -> (i32, i32) {
    %c0_i32 = arith.constant 0 : i32
    %c0_i32_0 = arith.constant 0 : i32
    return %arg0, %c0_i32 : i32, i32
  }
  func.func @transform_1(%arg0: i32) -> (i32, i32) {
    %c0_i32 = arith.constant 0 : i32
    %c0_i32_0 = arith.constant 0 : i32
    %c0_i32_1 = arith.constant 0 : i32
    return %c0_i32, %c0_i32_0 : i32, i32
  }
  func.func @transform_2(%arg0: i32) -> (i32, i32) {
    %c0_i32 = arith.constant 0 : i32
    %c0_i32_0 = arith.constant 0 : i32
    %c0_i32_1 = arith.constant 0 : i32
    return %c0_i32, %c0_i32_0 : i32, i32
  }
  func.func @transform_3(%arg0: i32) -> (i32, i32) {
    %c0_i32 = arith.constant 0 : i32
    %c0_i32_0 = arith.constant 0 : i32
    %c0_i32_1 = arith.constant 0 : i32
    return %c0_i32, %c0_i32_0 : i32, i32
  }
  func.func @transform_4(%arg0: i32) -> (i32, i32) {
    %c0_i32 = arith.constant 0 : i32
    %c0_i32_0 = arith.constant 0 : i32
    %c0_i32_1 = arith.constant 0 : i32
    return %c0_i32, %c0_i32_0 : i32, i32
  }
  func.func @transform_5(%arg0: i32) -> (i32, i32) {
    %c0_i32 = arith.constant 0 : i32
    %c0_i32_0 = arith.constant 0 : i32
    return %c0_i32, %arg0 : i32, i32
  }
}

</mosaic_0001>

<bundles_post_ra>
// kernel: tpu_custom_call.1
= control target key start
LH: loop header
LB: loop body
LE: loop exit
PB: predicated region body
PF: predicated region fallthrough
CT: control target
= control target key end

     0   :  { %10 = vsyncpa [#allocation3], 0  ;;  %s554_s0 = inlined_call_operand.hbm [shape: f32[8,256], index: 0, kind: input, shape index: {}]   ;;  %s555_s1 = inlined_call_operand.hbm [shape: f32[128,128], index: 1, kind: input, shape index: {}]   ;;  %s556_s2 = inlined_call_operand.hbm [shape: f32[128,128], index: 2, kind: input, shape index: {}]   ;;  %s557_s3 = inlined_call_operand.hbm [shape: f32[128,128], index: 3, kind: input, shape index: {}]   ;;  %s558_s4 = inlined_call_operand.hbm [shape: f32[8,128], index: 4, kind: input, shape index: {}]   ;;  %s559_s5 = inlined_call_operand.hbm [shape: f32[1,8], index: 5, kind: output, shape index: {}]  }
   0x1   :  { %11 = vsyncpa [#allocation6], 0 }
   0x2   :  { %12 = vsyncpa [#allocation9], 0  ;;  %s29_s20 = sshll.u32 %s555_s1, 4  ;;  %s30_s20 = int_to_ptr.hbm [resolvable:$true] %s29_s20 }
   0x3   :  { %13 = vsyncpa [#allocation4], 0  ;;  %s491_s21 = smov [#allocation5]   ;;  %s55_s25 = sshll.u32 %s557_s3, 4  ;;  %s56_s25 = int_to_ptr.hbm [resolvable:$true] %s55_s25 }
   0x4   :  { %s31_s22 = sshll.u32 %s491_s21, 4  ;;  %s492_s26 = smov 128   ;;  %s32_s22 = int_to_ptr.vmem [resolvable:$true] %s31_s22 }
   0x5   :  { %s493_s27 = smov 8   ;;  %s494_s28 = smov [#allocation8]  }
   0x6   :  { %37 = dma.hbm_to_vmem [thread:$0]  %s30_s20, 2048, %s32_s22, [#allocation6], %s492_s26, %s492_s26, %s493_s27  }
   0x7   :  { %s57_s29 = sshll.u32 %s494_s28, 4  ;;  %s19_s7 = sshll.u32 %s554_s0, 4  ;;  %s58_s29 = int_to_ptr.vmem [resolvable:$true] %s57_s29  ;;  %s20_s7 = int_to_ptr.hbm [resolvable:$true] %s19_s7 }
   0x8   :  { %63 = dma.hbm_to_vmem [thread:$0]  %s56_s25, 2048, %s58_s29, [#allocation9], %s492_s26, %s492_s26, %s493_s27  }
   0x9   :  { %s42_s9 = sshll.u32 %s556_s2, 4  ;;  %s495_s10 = smov [#allocation2]   ;;  %s43_s9 = int_to_ptr.hbm [resolvable:$true] %s42_s9 }
   0xa   :  { %s21_s11 = sshll.u32 %s495_s10, 4  ;;  %s496_s3 = smov [#allocation7]   ;;  %s22_s11 = int_to_ptr.vmem [resolvable:$true] %s21_s11 }
   0xb   :  { %24 = dma.hbm_to_vmem [thread:$0]  %s20_s7, 256, %s22_s11, [#allocation3]  }
   0xc   :  { %s44_s12 = sshll.u32 %s496_s3, 4  ;;  %s69_s15 = sshll.u32 %s558_s4, 4  ;;  %s45_s12 = int_to_ptr.vmem [resolvable:$true] %s44_s12  ;;  %s70_s15 = int_to_ptr.hbm [resolvable:$true] %s69_s15 }
   0xd   :  { %50 = dma.hbm_to_vmem [thread:$0]  %s43_s9, 2048, %s45_s12, [#allocation6], %s492_s26, %s492_s26, %s493_s27  }
   0xe   :  { %s497_s0 = smov [#allocation10]  }
   0xf   :  { %s71_s16 = sshll.u32 %s497_s0, 4  ;;  %s72_s16 = int_to_ptr.vmem [resolvable:$true] %s71_s16 }
  0x10   :  { %74 = dma.hbm_to_vmem [thread:$0]  %s70_s15, 128, %s72_s16, [#allocation9]  }
  0x11   :  { %483 = dma.done.wait [#allocation3], 256  }
  0x12   :  { %484 = vsyncadd [#allocation3], 4294967040 }
  0x13   :  { %485 = dma.done.wait [#allocation6], 4096  }
  0x14   :  { %486 = vsyncadd [#allocation6], 4294963200 }
  0x15   :  { %487 = dma.done.wait [#allocation9], 2176  }
  0x16   :  { %488 = vsyncadd [#allocation9], 4294965120  ;;  %v120_v0 = vld [vmem:[#allocation5 + $0x78] sm:$0xff]  ;;  %v119_v1 = vld [vmem:[#allocation5 + $0x70] sm:$0xff]  ;;  %s499_s2 = smov [#allocation11]   ;;  %s306_s19 = sshll.u32 %s559_s5, 4  ;;  %s307_s19 = int_to_ptr.hbm [resolvable:$true] %s306_s19 }
  0x17   :  { %122 = vmatpush.msra.mxu0 %v120_v0  ;;  %v118_v2 = vld [vmem:[#allocation5 + $0x68] sm:$0xff]  ;;  %v117_v3 = vld [vmem:[#allocation5 + $0x60] sm:$0xff]  ;;  %v116_v4 = vld [vmem:[#allocation5 + $0x58] sm:$0xff]  ;;  %s304_s4 = sshll.u32 %s499_s2, 4  ;;  %vm297_vm6 = vcmask 57344   ;;  %s305_s4 = int_to_ptr.vmem [resolvable:$true] %s304_s4 }
  0x18   :  { %v115_v5 = vld [vmem:[#allocation5 + $0x50] sm:$0xff]  ;;  %v114_v6 = vld [vmem:[#allocation5 + $0x48] sm:$0xff]  ;;  %v113_v7 = vld [vmem:[#allocation5 + $0x40] sm:$0xff] }
  0x19   :  { %123 = vmatpush.msra.mxu0 %v119_v1  ;;  %v112_v8 = vld [vmem:[#allocation5 + $0x38] sm:$0xff]  ;;  %v111_v9 = vld [vmem:[#allocation5 + $0x30] sm:$0xff]  ;;  %v110_v10 = vld [vmem:[#allocation5 + $0x28] sm:$0xff] }
  0x1a   :  { %v109_v11 = vld [vmem:[#allocation5 + $0x20] sm:$0xff]  ;;  %v108_v12 = vld [vmem:[#allocation5 + $0x18] sm:$0xff]  ;;  %v107_v13 = vld [vmem:[#allocation5 + $0x10] sm:$0xff] }
  0x1b   :  { %124 = vmatpush.msra.mxu0 %v118_v2  ;;  %v106_v14 = vld [vmem:[#allocation5 + $0x8] sm:$0xff]  ;;  %v105_v15 = vld [vmem:[#allocation5] sm:$0xff]  ;;  %v95_v16 = vld [vmem:[#allocation2] sm:$0xff] }
  0x1c   :  { %v329_v17 = vld [vmem:[#allocation10] ss:$0 sm:$0xff]  ;;  %v185_v21 = vld [vmem:[#allocation7 + $0x78] sm:$0xff]  ;;  %v184_v22 = vld [vmem:[#allocation7 + $0x70] sm:$0xff] }
  0x1d   :  { %125 = vmatpush.msra.mxu0 %v117_v3  ;;  %222 = vmatpush.msra.mxu2 %v185_v21  ;;  %v183_v23 = vld [vmem:[#allocation7 + $0x68] sm:$0xff]  ;;  %v201_v24 = vld [vmem:[#allocation8 + $0x78] sm:$0xff]  ;;  %v182_v25 = vld [vmem:[#allocation7 + $0x60] sm:$0xff] }
  0x1e   :  { %202 = vmatpush.msra.mxu1 %v201_v24  ;;  %v200_v26 = vld [vmem:[#allocation8 + $0x70] sm:$0xff]  ;;  %v181_v27 = vld [vmem:[#allocation7 + $0x58] sm:$0xff]  ;;  %v199_v28 = vld [vmem:[#allocation8 + $0x68] sm:$0xff] }
  0x1f   :  { %126 = vmatpush.msra.mxu0 %v116_v4  ;;  %223 = vmatpush.msra.mxu2 %v184_v22  ;;  %v180_v29 = vld [vmem:[#allocation7 + $0x50] sm:$0xff]  ;;  %v198_v30 = vld [vmem:[#allocation8 + $0x60] sm:$0xff]  ;;  %v179_v31 = vld [vmem:[#allocation7 + $0x48] sm:$0xff] }
  0x20   :  { %203 = vmatpush.msra.mxu1 %v200_v26  ;;  %v197_v32 = vld [vmem:[#allocation8 + $0x58] sm:$0xff]  ;;  %v178_v33 = vld [vmem:[#allocation7 + $0x40] sm:$0xff]  ;;  %v196_v34 = vld [vmem:[#allocation8 + $0x50] sm:$0xff] }
  0x21   :  { %127 = vmatpush.msra.mxu0 %v115_v5  ;;  %224 = vmatpush.msra.mxu2 %v183_v23  ;;  %v177_v35 = vld [vmem:[#allocation7 + $0x38] sm:$0xff]  ;;  %v195_v36 = vld [vmem:[#allocation8 + $0x48] sm:$0xff]  ;;  %v176_v37 = vld [vmem:[#allocation7 + $0x30] sm:$0xff] }
  0x22   :  { %204 = vmatpush.msra.mxu1 %v199_v28  ;;  %v194_v38 = vld [vmem:[#allocation8 + $0x40] sm:$0xff]  ;;  %v175_v39 = vld [vmem:[#allocation7 + $0x28] sm:$0xff]  ;;  %v193_v40 = vld [vmem:[#allocation8 + $0x38] sm:$0xff] }
  0x23   :  { %128 = vmatpush.msra.mxu0 %v114_v6  ;;  %225 = vmatpush.msra.mxu2 %v182_v25  ;;  %v174_v41 = vld [vmem:[#allocation7 + $0x20] sm:$0xff]  ;;  %v192_v43 = vld [vmem:[#allocation8 + $0x30] sm:$0xff]  ;;  %v173_v44 = vld [vmem:[#allocation7 + $0x18] sm:$0xff] }
  0x24   :  { %205 = vmatpush.msra.mxu1 %v198_v30  ;;  %v191_v45 = vld [vmem:[#allocation8 + $0x28] sm:$0xff]  ;;  %v172_v46 = vld [vmem:[#allocation7 + $0x10] sm:$0xff]  ;;  %v190_v48 = vld [vmem:[#allocation8 + $0x20] sm:$0xff] }
  0x25   :  { %129 = vmatpush.msra.mxu0 %v113_v7  ;;  %226 = vmatpush.msra.mxu2 %v181_v27  ;;  %v171_v49 = vld [vmem:[#allocation7 + $0x8] sm:$0xff]  ;;  %v189_v50 = vld [vmem:[#allocation8 + $0x18] sm:$0xff]  ;;  %v170_v51 = vld [vmem:[#allocation7] sm:$0xff]  ;;  %v498_v27 = vmov 0  }
  0x26   :  { %206 = vmatpush.msra.mxu1 %v197_v32  ;;  %v188_v56 = vld [vmem:[#allocation8 + $0x10] sm:$0xff]  ;;  %v187_v57 = vld [vmem:[#allocation8 + $0x8] sm:$0xff]  ;;  %v186_v59 = vld [vmem:[#allocation8] sm:$0xff]  ;;  %327 = vset.pattern.permute.xlu2 %v498_v27 }
  0x27   :  { %130 = vmatpush.msra.mxu0 %v112_v8  ;;  %227 = vmatpush.msra.mxu2 %v180_v29  ;;  %v96_v60 = vld [vmem:[#allocation2 + $0x8] sm:$0xff]  ;;  %v330_v5 = vld [vmem:[#allocation10 + $0x1] ss:$0 sm:$0xff]  ;;  %v331_v8 = vld [vmem:[#allocation10 + $0x2] ss:$0 sm:$0xff] }
  0x28   :  { %207 = vmatpush.msra.mxu1 %v196_v34  ;;  %v104_v25 = vld [vmem:[#allocation10 + $0x7] sm:$0x1]  ;;  %328 = vset.pattern.permute.xlu0 %v498_v27 }
  0x29   :  { %131 = vmatpush.msra.mxu0 %v111_v9  ;;  %228 = vmatpush.msra.mxu2 %v179_v31 }
  0x2a   :  { %208 = vmatpush.msra.mxu1 %v195_v36  ;;  %274 = vperm.xlu2 %327, %v104_v25  }
  0x2b   :  { %132 = vmatpush.msra.mxu0 %v110_v10  ;;  %229 = vmatpush.msra.mxu2 %v178_v33 }
  0x2c   :  { %209 = vmatpush.msra.mxu1 %v194_v38  ;;  %v334_v38 = vld [vmem:[#allocation10 + $0x5] ss:$0 sm:$0xff] }
  0x2d   :  { %133 = vmatpush.msra.mxu0 %v109_v11  ;;  %230 = vmatpush.msra.mxu2 %v177_v35  ;;  %v333_v35 = vld [vmem:[#allocation10 + $0x4] ss:$0 sm:$0xff] }
  0x2e   :  { %210 = vmatpush.msra.mxu1 %v193_v40 }
  0x2f   :  { %134 = vmatpush.msra.mxu0 %v108_v12  ;;  %231 = vmatpush.msra.mxu2 %v176_v37 }
  0x30   :  { %211 = vmatpush.msra.mxu1 %v192_v43 }
  0x31   :  { %135 = vmatpush.msra.mxu0 %v107_v13  ;;  %232 = vmatpush.msra.mxu2 %v175_v39  ;;  %v332_v13 = vld [vmem:[#allocation10 + $0x3] ss:$0 sm:$0xff] }
  0x32   :  { %212 = vmatpush.msra.mxu1 %v191_v45 }
  0x33   :  { %136 = vmatpush.msra.mxu0 %v106_v14  ;;  %233 = vmatpush.msra.mxu2 %v174_v41 }
  0x34   :  { %213 = vmatpush.msra.mxu1 %v190_v48 }
  0x35   :  { %137 = vmatpush.msra.mxu0 %v105_v15  ;;  %234 = vmatpush.msra.mxu2 %v173_v44 }
  0x36   :  { %138 = vmatmul.f32.vlgmr.msra.gmra.mxu0 %v95_v16  ;;  %214 = vmatpush.msra.mxu1 %v189_v50 }
  0x37   :  { %235 = vmatpush.msra.mxu2 %v172_v46 }
  0x38   :  { %215 = vmatpush.msra.mxu1 %v188_v56 }
  0x39   :  { %236 = vmatpush.msra.mxu2 %v171_v49 }
  0x3a   :  { %216 = vmatpush.msra.mxu1 %v187_v57 }
  0x3b   :  { %237 = vmatpush.msra.mxu2 %v170_v51 }
  0x3c   :  { %217 = vmatpush.msra.mxu1 %v186_v59 }
  0x3d   :  { %218 = vmatmul.f32.vlgmr.msra.gmra.mxu1 %v96_v60 }
  0x84   :  { %v275_v43 = vpop.permute.xlu2 %274 }
  0xb3   :  { %v139_v18 = vpop.f32.mrf.mxu0 }
  0xb4   :  { %v545_v19 = vadd.f32 %v329_v17, %v139_v18 }
  0xb6   :  { %142 = vadd.xlane.f32.xlu0 %v545_v19  ;;  %v145_v20 = vmul.f32 %v545_v19, %v545_v19 }
  0xba   :  { %v219_v12 = vpop.f32.mrf.mxu1 }
  0xbe   :  { %146 = vadd.xlane.f32.xlu0 %v145_v20 }
 0x129   :  { %v143_v42 = vpop.xlane.xlu0 %142 }
 0x12a   :  { %v144_v47 = vmul.f32 0.03125, %v143_v42  ;;  %v103_v42 = vld [vmem:[#allocation10 + $0x6] sm:$0x1] }
 0x12c   :  { %v149_v53 = vmul.f32 %v144_v47, %v144_v47  ;;  %v152_v4 = vsub.f32 %v545_v19, %v144_v47 }
 0x131   :  { %v147_v52 = vpop.xlane.xlu0 %146 }
 0x132   :  { %v148_v54 = vmul.f32 0.03125, %v147_v52 }
 0x134   :  { %v150_v55 = vsub.f32 %v148_v54, %v149_v53 }
 0x136   :  { %v151_v58 = vmax.f32 %v150_v55, 0.0 }
 0x138   :  { %v153_v61 = vadd.f32 1e-05, %v151_v58 }
 0x13a   :  { %335 = vrsqrt.f32 %v153_v61  ;;  %vm160_vm1 = vweird.f32 %v153_v61 }
 0x140   :  { %v336_v62 = vpop.eup %335 }
 0x141   :  { %v155_v63 = vmul.f32 %v336_v62, %v153_v61  ;;  %vm161_vm0 = vweird.f32 %v336_v62 }
 0x142   :  { %vm162_vm2 = vmor %vm160_vm1, %vm161_vm0 }
 0x143   :  { %v156_v0 = vmul.f32 %v336_v62, %v155_v63 }
 0x145   :  { %v157_v1 = vmul.f32 0.5, %v156_v0 }
 0x147   :  { %v158_v2 = vsub.f32 1.5, %v157_v1 }
 0x149   :  { %v159_v3 = vmul.f32 %v336_v62, %v158_v2 }
 0x14b   :  { %v163_v6 = vsel %vm162_vm2, %v336_v62, %v159_v3 }
 0x14c   :  { %v164_v7 = vmul.f32 %v163_v6, %v152_v4 }
 0x14e   :  { %v166_v9 = vmul.f32 %v330_v5, %v164_v7 }
 0x150   :  { %v168_v10 = vadd.f32 %v331_v8, %v166_v9 }
 0x152   :  { %v169_v11 = vmax.f32 %v168_v10, 0.0 }
 0x154   :  { %238 = vmatmul.f32.vlgmr.msra.gmra.mxu2 %v169_v11 }
 0x1d7   :  { %v239_v14 = vpop.f32.mrf.mxu2 }
 0x1d8   :  { %v240_v15 = vadd.f32 %v239_v14, %v219_v12 }
 0x1da   :  { %v243_v16 = vadd.f32 %v332_v13, %v240_v15 }
 0x1dc   :  { %244 = vadd.xlane.f32.xlu1 %v243_v16  ;;  %v247_v17 = vmul.f32 %v243_v16, %v243_v16 }
 0x1e4   :  { %248 = vadd.xlane.f32.xlu1 %v247_v17 }
 0x24f   :  { %v245_v18 = vpop.xlane.xlu1 %244 }
 0x250   :  { %v246_v20 = vmul.f32 0.03125, %v245_v18 }
 0x252   :  { %v251_v21 = vmul.f32 %v246_v20, %v246_v20  ;;  %v254_v34 = vsub.f32 %v243_v16, %v246_v20 }
 0x257   :  { %v249_v19 = vpop.xlane.xlu1 %248 }
 0x258   :  { %v250_v22 = vmul.f32 0.03125, %v249_v19 }
 0x25a   :  { %v252_v23 = vsub.f32 %v250_v22, %v251_v21 }
 0x25c   :  { %v253_v24 = vmax.f32 %v252_v23, 0.0 }
 0x25e   :  { %v255_v26 = vadd.f32 1e-05, %v253_v24 }
 0x260   :  { %337 = vrsqrt.f32 %v255_v26  ;;  %vm262_vm4 = vweird.f32 %v255_v26 }
 0x266   :  { %v338_v28 = vpop.eup %337 }
 0x267   :  { %v257_v29 = vmul.f32 %v338_v28, %v255_v26  ;;  %vm263_vm3 = vweird.f32 %v338_v28 }
 0x268   :  { %vm264_vm5 = vmor %vm262_vm4, %vm263_vm3 }
 0x269   :  { %v258_v30 = vmul.f32 %v338_v28, %v257_v29 }
 0x26b   :  { %v259_v31 = vmul.f32 0.5, %v258_v30 }
 0x26d   :  { %v260_v32 = vsub.f32 1.5, %v259_v31 }
 0x26f   :  { %v261_v33 = vmul.f32 %v338_v28, %v260_v32 }
 0x271   :  { %v265_v36 = vsel %vm264_vm5, %v338_v28, %v261_v33 }
 0x272   :  { %v266_v37 = vmul.f32 %v265_v36, %v254_v34 }
 0x274   :  { %v268_v39 = vmul.f32 %v333_v35, %v266_v37 }
 0x276   :  { %v270_v40 = vadd.f32 %v334_v38, %v268_v39 }
 0x278   :  { %v271_v41 = vmax.f32 %v270_v40, 0.0 }
 0x27a   :  { %292 = vmatpush.xpose.msra.mxu3 %v271_v41 }
 0x27d   :  { %293 = vmatmul.f32.vlgmr.msra.gmra.mxu3 %v103_v42 }
 0x300   :  { %v294_v44 = vpop.f32.mrf.mxu3 }
 0x301   :  { %v295_v45 = vadd.f32 %v294_v44, %v275_v43 }
 0x303   :  { %298 = vst.msk [vmem:[#allocation11] sm:$0x1] %vm297_vm6, %v295_v45 }
 0x304   :  { %309 = dma.vmem_to_hbm [thread:$0]  %s305_s4, 16, %s307_s19, [#allocation4]  }
 0x305   :  { %489 = dma.done.wait [#allocation4], 16  }
 0x306   :  { %490 = vsyncadd [#allocation4], 4294967280 }
 0x307   :  { %314 = vsyncpa [#allocation3], 1 }
 0x308   :  { %315 = vsyncpa [#allocation6], 1 }
 0x309   :  { %316 = vsyncpa [#allocation9], 1 }
 0x30a   :  { %317 = vsyncpa [#allocation4], 1 }

</bundles_post_ra>
